<compile_context>
chip_gen: v7x
topology: tpu7x:2x2x1
jax: 0.10.0
libtpu: 0.0.40
codegen_flags: <defaults>
</compile_context>

<pallas_src>
import functools

import jax
import jax.numpy as jnp
from jax.experimental import pallas as pl
from jax.experimental.pallas import tpu as pltpu

_EPS = 1e-8


def _npair_loss_kernel(anchor_ref, pos_ref, neg_ref, psum_ref, *,
                       inv_temperature, num_neg, batch, block_b):
    i = pl.program_id(0)

    a = anchor_ref[...].astype(jnp.float32)                      # (TB, D)
    p = pos_ref[...].astype(jnp.float32)                         # (TB, D)

    # Positive cosine similarity (feature dim D lives on lanes).
    a_norm = jnp.sqrt(jnp.sum(a * a, axis=1, keepdims=True))     # (TB, 1)
    p_norm = jnp.sqrt(jnp.sum(p * p, axis=1, keepdims=True))     # (TB, 1)
    dot_pos = jnp.sum(a * p, axis=1, keepdims=True)              # (TB, 1)
    sim_pos = dot_pos / jnp.maximum(a_norm * p_norm, _EPS) * inv_temperature

    # Negatives: static unrolled loop over N with an online (stable) LSE.
    # Each step only touches a (TB, D) slice -> no (TB, N, D) f32 temporary.
    m = jnp.full((block_b, 1), -jnp.inf, dtype=jnp.float32)      # running max
    s = jnp.zeros((block_b, 1), dtype=jnp.float32)               # running sum(exp)
    for j in range(num_neg):
        nj = neg_ref[:, j, :].astype(jnp.float32)                # (TB, D)
        dot_j = jnp.sum(a * nj, axis=1, keepdims=True)           # (TB, 1)
        n_norm = jnp.sqrt(jnp.sum(nj * nj, axis=1, keepdims=True))
        sim_j = dot_j / jnp.maximum(a_norm * n_norm, _EPS) * inv_temperature
        m_new = jnp.maximum(m, sim_j)
        s = s * jnp.exp(m - m_new) + jnp.exp(sim_j - m_new)
        m = m_new

    lse = m + jnp.log(s)                                         # (TB, 1)
    per_sample = lse - sim_pos                                   # (TB, 1)

    # Mask rows past the true batch size (ragged last tile reads padding).
    row = jax.lax.broadcasted_iota(jnp.int32, (block_b, 1), 0) + i * block_b
    per_sample = jnp.where(row < batch, per_sample, 0.0)

    # Lane-dense partial-sum row for this batch tile.
    psum_ref[...] = jnp.broadcast_to(jnp.sum(per_sample), (1, 128))


def _pick_block_b(batch, num_neg, feat, itemsize):
    """Batch tile sized so the double-buffered negatives window stays small
    (fits comfortably inside v5e's 16 MiB / v7x's 32 MiB scoped VMEM)."""
    sublane = {4: 8, 2: 16, 1: 32}.get(itemsize, 8)
    padded_n = -(-num_neg // sublane) * sublane          # sublane padding of (N, D) tile
    per_row_bytes = max(1, padded_n * feat * itemsize)
    budget = 4 * 1024 * 1024                             # per negatives buffer (x2 dbl-buf)
    tb = max(8, min(1024, budget // per_row_bytes))
    tb -= tb % 8
    return batch if tb >= batch else tb


def npair_loss(anchor, positive, negatives, temperature=0.1, block_b=None):
    """anchor/positive: (B, D); negatives: (B, N, D). Returns scalar f32 loss."""
    B, D = anchor.shape
    Bn, N, Dn = negatives.shape
    assert Bn == B and Dn == D and positive.shape == (B, D)

    if block_b is None:
        block_b = _pick_block_b(B, N, D, jnp.dtype(negatives.dtype).itemsize)
    block_b = max(1, min(block_b, B))
    num_tiles = pl.cdiv(B, block_b)

    kernel = functools.partial(
        _npair_loss_kernel,
        inv_temperature=float(1.0 / temperature),
        num_neg=N,
        batch=B,
        block_b=block_b,
    )

    partials = pl.pallas_call(
        kernel,
        out_shape=jax.ShapeDtypeStruct((num_tiles, 128), jnp.float32),
        grid_spec=pltpu.PrefetchScalarGridSpec(
            num_scalar_prefetch=0,
            grid=(num_tiles,),
            in_specs=[
                pl.BlockSpec((block_b, D), lambda i: (i, 0)),
                pl.BlockSpec((block_b, D), lambda i: (i, 0)),
                pl.BlockSpec((block_b, N, D), lambda i: (i, 0, 0)),
            ],
            out_specs=pl.BlockSpec((1, 128), lambda i: (i, 0)),
        ),
        compiler_params=pltpu.CompilerParams(
            dimension_semantics=("parallel",)),
    )(anchor, positive, negatives)

    return jnp.sum(partials[:, 0]) / B


def _npair_loss_ref(anchor, positive, negatives, temperature=0.1):
    """Pure-JAX reference for correctness checking."""
    a = anchor.astype(jnp.float32)
    p = positive.astype(jnp.float32)
    n = negatives.astype(jnp.float32)
    a_norm = jnp.linalg.norm(a, axis=1)
    p_norm = jnp.linalg.norm(p, axis=1)
    sim_pos = jnp.sum(a * p, axis=1) / jnp.maximum(a_norm * p_norm, _EPS)
    sim_pos = sim_pos / temperature
    n_norm = jnp.linalg.norm(n, axis=2)
    sim_neg = jnp.sum(a[:, None, :] * n, axis=2) / jnp.maximum(
        a_norm[:, None] * n_norm, _EPS)
    sim_neg = sim_neg / temperature
    loss = jnp.log(jnp.sum(jnp.exp(sim_neg), axis=1)) - sim_pos
    return jnp.mean(loss)


if __name__ == "__main__":
    key = jax.random.PRNGKey(0)
    B, N, D = 8, 4, 128  # batch, negatives per anchor, feature dim
    k1, k2, k3 = jax.random.split(key, 3)
    anchor = jax.random.normal(k1, (B, D), dtype=jnp.float32)
    positive = jax.random.normal(k2, (B, D), dtype=jnp.float32)
    negatives = jax.random.normal(k3, (B, N, D), dtype=jnp.float32)

    loss = npair_loss(anchor, positive, negatives, temperature=0.1)
    jax.block_until_ready(loss)
    ref = _npair_loss_ref(anchor, positive, negatives, temperature=0.1)
    assert jnp.allclose(loss, ref, rtol=1e-4, atol=1e-4), (loss, ref)

    # Exercise the multi-tile grid + ragged last tile (B not divisible by TB).
    B2 = 12
    k4, k5, k6 = jax.random.split(jax.random.PRNGKey(1), 3)
    anchor2 = jax.random.normal(k4, (B2, D), dtype=jnp.float32)
    positive2 = jax.random.normal(k5, (B2, D), dtype=jnp.float32)
    negatives2 = jax.random.normal(k6, (B2, N, D), dtype=jnp.float32)
    loss2 = npair_loss(anchor2, positive2, negatives2, temperature=0.1, block_b=8)
    jax.block_until_ready(loss2)
    ref2 = _npair_loss_ref(anchor2, positive2, negatives2, temperature=0.1)
    assert jnp.allclose(loss2, ref2, rtol=1e-4, atol=1e-4), (loss2, ref2)

    print("KERNEL_OK")
</pallas_src>

<mosaic_0001>
module attributes {stable_mosaic.version = 11 : i64} {
  func.func @_npair_loss_kernel(%arg0: i32, %arg1: memref<8x128xf32, #tpu.memory_space<vmem>>, %arg2: memref<8x128xf32, #tpu.memory_space<vmem>>, %arg3: memref<8x4x128xf32, #tpu.memory_space<vmem>>, %arg4: memref<1x128xf32, #tpu.memory_space<vmem>>) attributes {dimension_semantics = [#tpu.dimension_semantics<parallel>], iteration_bounds = array<i64: 1>, scalar_prefetch = 0 : i64, scratch_operands = 0 : i64, tpu.core_type = #tpu.core_type<tc>, window_params = [{transform_indices = @transform_0, window_bounds = array<i64: 8, 128>}, {transform_indices = @transform_1, window_bounds = array<i64: 8, 128>}, {transform_indices = @transform_2, window_bounds = array<i64: 8, 4, 128>}, {transform_indices = @transform_3, window_bounds = array<i64: 1, 128>}]} {
    %c0 = arith.constant 0 : index
    %c0_0 = arith.constant 0 : index
    %0 = vector.load %arg1[%c0, %c0_0] : memref<8x128xf32, #tpu.memory_space<vmem>>, vector<8x128xf32>
    %c0_1 = arith.constant 0 : index
    %c0_2 = arith.constant 0 : index
    %1 = vector.load %arg2[%c0_1, %c0_2] : memref<8x128xf32, #tpu.memory_space<vmem>>, vector<8x128xf32>
    %2 = arith.mulf %0, %0 : vector<8x128xf32>
    %cst = arith.constant dense<0.000000e+00> : vector<8xf32>
    %3 = vector.multi_reduction <add>, %2, %cst [1] : vector<8x128xf32> to vector<8xf32>
    %4 = vector.shape_cast %3 : vector<8xf32> to vector<8x1xf32>
    %5 = math.sqrt %4 : vector<8x1xf32>
    %6 = arith.mulf %1, %1 : vector<8x128xf32>
    %cst_3 = arith.constant dense<0.000000e+00> : vector<8xf32>
    %7 = vector.multi_reduction <add>, %6, %cst_3 [1] : vector<8x128xf32> to vector<8xf32>
    %8 = vector.shape_cast %7 : vector<8xf32> to vector<8x1xf32>
    %9 = math.sqrt %8 : vector<8x1xf32>
    %10 = arith.mulf %0, %1 : vector<8x128xf32>
    %cst_4 = arith.constant dense<0.000000e+00> : vector<8xf32>
    %11 = vector.multi_reduction <add>, %10, %cst_4 [1] : vector<8x128xf32> to vector<8xf32>
    %12 = vector.shape_cast %11 : vector<8xf32> to vector<8x1xf32>
    %13 = arith.mulf %5, %9 : vector<8x1xf32>
    %cst_5 = arith.constant 9.99999993E-9 : f32
    %14 = vector.broadcast %cst_5 : f32 to vector<8x1xf32>
    %15 = arith.maximumf %13, %14 : vector<8x1xf32>
    %16 = arith.divf %12, %15 : vector<8x1xf32>
    %cst_6 = arith.constant 1.000000e+01 : f32
    %17 = vector.broadcast %cst_6 : f32 to vector<8x1xf32>
    %18 = arith.mulf %16, %17 : vector<8x1xf32>
    %cst_7 = arith.constant 0xFF800000 : f32
    %19 = vector.broadcast %cst_7 : f32 to vector<8x1xf32>
    %cst_8 = arith.constant 0.000000e+00 : f32
    %20 = vector.broadcast %cst_8 : f32 to vector<8x1xf32>
    %c0_9 = arith.constant 0 : index
    %c0_10 = arith.constant 0 : index
    %c0_11 = arith.constant 0 : index
    %21 = vector.load %arg3[%c0_9, %c0_10, %c0_11] : memref<8x4x128xf32, #tpu.memory_space<vmem>>, vector<8x1x128xf32>
    %22 = vector.shape_cast %21 : vector<8x1x128xf32> to vector<8x128xf32>
    %23 = arith.mulf %0, %22 : vector<8x128xf32>
    %cst_12 = arith.constant dense<0.000000e+00> : vector<8xf32>
    %24 = vector.multi_reduction <add>, %23, %cst_12 [1] : vector<8x128xf32> to vector<8xf32>
    %25 = vector.shape_cast %24 : vector<8xf32> to vector<8x1xf32>
    %26 = arith.mulf %22, %22 : vector<8x128xf32>
    %cst_13 = arith.constant dense<0.000000e+00> : vector<8xf32>
    %27 = vector.multi_reduction <add>, %26, %cst_13 [1] : vector<8x128xf32> to vector<8xf32>
    %28 = vector.shape_cast %27 : vector<8xf32> to vector<8x1xf32>
    %29 = math.sqrt %28 : vector<8x1xf32>
    %30 = arith.mulf %5, %29 : vector<8x1xf32>
    %cst_14 = arith.constant 9.99999993E-9 : f32
    %31 = vector.broadcast %cst_14 : f32 to vector<8x1xf32>
    %32 = arith.maximumf %30, %31 : vector<8x1xf32>
    %33 = arith.divf %25, %32 : vector<8x1xf32>
    %cst_15 = arith.constant 1.000000e+01 : f32
    %34 = vector.broadcast %cst_15 : f32 to vector<8x1xf32>
    %35 = arith.mulf %33, %34 : vector<8x1xf32>
    %36 = arith.maximumf %19, %35 : vector<8x1xf32>
    %37 = arith.subf %19, %36 : vector<8x1xf32>
    %38 = math.exp %37 : vector<8x1xf32>
    %39 = arith.mulf %20, %38 : vector<8x1xf32>
    %40 = arith.subf %35, %36 : vector<8x1xf32>
    %41 = math.exp %40 : vector<8x1xf32>
    %42 = arith.addf %39, %41 : vector<8x1xf32>
    %c0_16 = arith.constant 0 : index
    %c1 = arith.constant 1 : index
    %c0_17 = arith.constant 0 : index
    %43 = vector.load %arg3[%c0_16, %c1, %c0_17] : memref<8x4x128xf32, #tpu.memory_space<vmem>>, vector<8x1x128xf32>
    %44 = vector.shape_cast %43 : vector<8x1x128xf32> to vector<8x128xf32>
    %45 = arith.mulf %0, %44 : vector<8x128xf32>
    %cst_18 = arith.constant dense<0.000000e+00> : vector<8xf32>
    %46 = vector.multi_reduction <add>, %45, %cst_18 [1] : vector<8x128xf32> to vector<8xf32>
    %47 = vector.shape_cast %46 : vector<8xf32> to vector<8x1xf32>
    %48 = arith.mulf %44, %44 : vector<8x128xf32>
    %cst_19 = arith.constant dense<0.000000e+00> : vector<8xf32>
    %49 = vector.multi_reduction <add>, %48, %cst_19 [1] : vector<8x128xf32> to vector<8xf32>
    %50 = vector.shape_cast %49 : vector<8xf32> to vector<8x1xf32>
    %51 = math.sqrt %50 : vector<8x1xf32>
    %52 = arith.mulf %5, %51 : vector<8x1xf32>
    %cst_20 = arith.constant 9.99999993E-9 : f32
    %53 = vector.broadcast %cst_20 : f32 to vector<8x1xf32>
    %54 = arith.maximumf %52, %53 : vector<8x1xf32>
    %55 = arith.divf %47, %54 : vector<8x1xf32>
    %cst_21 = arith.constant 1.000000e+01 : f32
    %56 = vector.broadcast %cst_21 : f32 to vector<8x1xf32>
    %57 = arith.mulf %55, %56 : vector<8x1xf32>
    %58 = arith.maximumf %36, %57 : vector<8x1xf32>
    %59 = arith.subf %36, %58 : vector<8x1xf32>
    %60 = math.exp %59 : vector<8x1xf32>
    %61 = arith.mulf %42, %60 : vector<8x1xf32>
    %62 = arith.subf %57, %58 : vector<8x1xf32>
    %63 = math.exp %62 : vector<8x1xf32>
    %64 = arith.addf %61, %63 : vector<8x1xf32>
    %c0_22 = arith.constant 0 : index
    %c2 = arith.constant 2 : index
    %c0_23 = arith.constant 0 : index
    %65 = vector.load %arg3[%c0_22, %c2, %c0_23] : memref<8x4x128xf32, #tpu.memory_space<vmem>>, vector<8x1x128xf32>
    %66 = vector.shape_cast %65 : vector<8x1x128xf32> to vector<8x128xf32>
    %67 = arith.mulf %0, %66 : vector<8x128xf32>
    %cst_24 = arith.constant dense<0.000000e+00> : vector<8xf32>
    %68 = vector.multi_reduction <add>, %67, %cst_24 [1] : vector<8x128xf32> to vector<8xf32>
    %69 = vector.shape_cast %68 : vector<8xf32> to vector<8x1xf32>
    %70 = arith.mulf %66, %66 : vector<8x128xf32>
    %cst_25 = arith.constant dense<0.000000e+00> : vector<8xf32>
    %71 = vector.multi_reduction <add>, %70, %cst_25 [1] : vector<8x128xf32> to vector<8xf32>
    %72 = vector.shape_cast %71 : vector<8xf32> to vector<8x1xf32>
    %73 = math.sqrt %72 : vector<8x1xf32>
    %74 = arith.mulf %5, %73 : vector<8x1xf32>
    %cst_26 = arith.constant 9.99999993E-9 : f32
    %75 = vector.broadcast %cst_26 : f32 to vector<8x1xf32>
    %76 = arith.maximumf %74, %75 : vector<8x1xf32>
    %77 = arith.divf %69, %76 : vector<8x1xf32>
    %cst_27 = arith.constant 1.000000e+01 : f32
    %78 = vector.broadcast %cst_27 : f32 to vector<8x1xf32>
    %79 = arith.mulf %77, %78 : vector<8x1xf32>
    %80 = arith.maximumf %58, %79 : vector<8x1xf32>
    %81 = arith.subf %58, %80 : vector<8x1xf32>
    %82 = math.exp %81 : vector<8x1xf32>
    %83 = arith.mulf %64, %82 : vector<8x1xf32>
    %84 = arith.subf %79, %80 : vector<8x1xf32>
    %85 = math.exp %84 : vector<8x1xf32>
    %86 = arith.addf %83, %85 : vector<8x1xf32>
    %c0_28 = arith.constant 0 : index
    %c3 = arith.constant 3 : index
    %c0_29 = arith.constant 0 : index
    %87 = vector.load %arg3[%c0_28, %c3, %c0_29] : memref<8x4x128xf32, #tpu.memory_space<vmem>>, vector<8x1x128xf32>
    %88 = vector.shape_cast %87 : vector<8x1x128xf32> to vector<8x128xf32>
    %89 = arith.mulf %0, %88 : vector<8x128xf32>
    %cst_30 = arith.constant dense<0.000000e+00> : vector<8xf32>
    %90 = vector.multi_reduction <add>, %89, %cst_30 [1] : vector<8x128xf32> to vector<8xf32>
    %91 = vector.shape_cast %90 : vector<8xf32> to vector<8x1xf32>
    %92 = arith.mulf %88, %88 : vector<8x128xf32>
    %cst_31 = arith.constant dense<0.000000e+00> : vector<8xf32>
    %93 = vector.multi_reduction <add>, %92, %cst_31 [1] : vector<8x128xf32> to vector<8xf32>
    %94 = vector.shape_cast %93 : vector<8xf32> to vector<8x1xf32>
    %95 = math.sqrt %94 : vector<8x1xf32>
    %96 = arith.mulf %5, %95 : vector<8x1xf32>
    %cst_32 = arith.constant 9.99999993E-9 : f32
    %97 = vector.broadcast %cst_32 : f32 to vector<8x1xf32>
    %98 = arith.maximumf %96, %97 : vector<8x1xf32>
    %99 = arith.divf %91, %98 : vector<8x1xf32>
    %cst_33 = arith.constant 1.000000e+01 : f32
    %100 = vector.broadcast %cst_33 : f32 to vector<8x1xf32>
    %101 = arith.mulf %99, %100 : vector<8x1xf32>
    %102 = arith.maximumf %80, %101 : vector<8x1xf32>
    %103 = arith.subf %80, %102 : vector<8x1xf32>
    %104 = math.exp %103 : vector<8x1xf32>
    %105 = arith.mulf %86, %104 : vector<8x1xf32>
    %106 = arith.subf %101, %102 : vector<8x1xf32>
    %107 = math.exp %106 : vector<8x1xf32>
    %108 = arith.addf %105, %107 : vector<8x1xf32>
    %109 = math.log %108 : vector<8x1xf32>
    %110 = arith.addf %102, %109 : vector<8x1xf32>
    %111 = arith.subf %110, %18 : vector<8x1xf32>
    %112 = tpu.iota {dimensions = array<i32: 0>} : vector<8x1xi32>
    %c8_i32 = arith.constant 8 : i32
    %113 = arith.muli %arg0, %c8_i32 : i32
    %114 = vector.broadcast %113 : i32 to vector<8x1xi32>
    %115 = arith.addi %112, %114 : vector<8x1xi32>
    %c8_i32_34 = arith.constant 8 : i32
    %116 = vector.broadcast %c8_i32_34 : i32 to vector<8x1xi32>
    %117 = arith.cmpi slt, %115, %116 : vector<8x1xi32>
    %cst_35 = arith.constant 0.000000e+00 : f32
    %118 = vector.broadcast %cst_35 : f32 to vector<8x1xf32>
    %119 = arith.select %117, %111, %118 : vector<8x1xi1>, vector<8x1xf32>
    %120 = vector.shape_cast %119 : vector<8x1xf32> to vector<1x8x1xf32>
    %cst_36 = arith.constant dense<0.000000e+00> : vector<1xf32>
    %121 = vector.multi_reduction <add>, %120, %cst_36 [1, 2] : vector<1x8x1xf32> to vector<1xf32>
    %122 = vector.shape_cast %121 : vector<1xf32> to vector<1x1x1xf32>
    %123 = vector.extract %122[0, 0, 0] : f32 from vector<1x1x1xf32>
    %124 = vector.broadcast %123 : f32 to vector<1x128xf32>
    %c0_37 = arith.constant 0 : index
    %c0_38 = arith.constant 0 : index
    %125 = vector.load %arg4[%c0_37, %c0_38] : memref<1x128xf32, #tpu.memory_space<vmem>>, vector<1x128xf32>
    tpu.vector_store %arg4[%c0_37, %c0_38], %124 {strides = array<i32>} : memref<1x128xf32, #tpu.memory_space<vmem>>, vector<1x128xf32>,
    return
  }
  func.func @transform_0(%arg0: i32) -> (i32, i32) {
    %c0_i32 = arith.constant 0 : i32
    %c0_i32_0 = arith.constant 0 : i32
    return %arg0, %c0_i32 : i32, i32
  }
  func.func @transform_1(%arg0: i32) -> (i32, i32) {
    %c0_i32 = arith.constant 0 : i32
    %c0_i32_0 = arith.constant 0 : i32
    return %arg0, %c0_i32 : i32, i32
  }
  func.func @transform_2(%arg0: i32) -> (i32, i32, i32) {
    %c0_i32 = arith.constant 0 : i32
    %c0_i32_0 = arith.constant 0 : i32
    %c0_i32_1 = arith.constant 0 : i32
    return %arg0, %c0_i32, %c0_i32_0 : i32, i32, i32
  }
  func.func @transform_3(%arg0: i32) -> (i32, i32) {
    %c0_i32 = arith.constant 0 : i32
    %c0_i32_0 = arith.constant 0 : i32
    return %arg0, %c0_i32 : i32, i32
  }
}

</mosaic_0001>

<bundles_post_ra>
// kernel: tpu_custom_call.1
= control target key start
LH: loop header
LB: loop body
LE: loop exit
PB: predicated region body
PF: predicated region fallthrough
CT: control target
= control target key end

     0   :  { %8 = vsyncpa [#allocation3], 0  ;;  %s940_s0 = inlined_call_operand.hbm [shape: f32[8,128], index: 0, kind: input, shape index: {}]   ;;  %s941_s1 = inlined_call_operand.hbm [shape: f32[8,128], index: 1, kind: input, shape index: {}]   ;;  %s942_s2 = inlined_call_operand.hbm [shape: f32[8,4,128], index: 2, kind: input, shape index: {}]   ;;  %s943_s3 = inlined_call_operand.hbm [shape: f32[1,128], index: 3, kind: output, shape index: {}]  }
   0x1   :  { %9 = vsyncpa [#allocation6], 0 }
   0x2   :  { %10 = vsyncpa [#allocation4], 0  ;;  %s622_s12 = smov [#allocation5]   ;;  %s623_s14 = smov [#allocation2]  }
   0x3   :  { %s27_s13 = sshll.u32 %s622_s12, 4  ;;  %s17_s15 = sshll.u32 %s623_s14, 4  ;;  %s28_s13 = int_to_ptr.vmem [resolvable:$true] %s27_s13  ;;  %s18_s15 = int_to_ptr.vmem [resolvable:$true] %s17_s15 }
   0x4   :  { %s528_s18 = scalar_lea.hbm %s941_s1, 128 }
   0x5   :  { %p529_p0 = scmp.ne.s32.totalorder %s941_s1, %s528_s18  ;;  %p532_p1 = scmp.lt.u32.totalorder %s528_s18, %s941_s1 }
   0x7   :  { %p534_p2 = pnand %p532_p1, %p529_p0 }
   0x9   :  { %537 = shalt.err (!%p534_p2)
}
   0xa   :  { %s538_s23 = scalar_lea.vmem %s28_s13, 128  ;;  %p543_p4 = scmp.lt.s32.totalorder %s28_s13, %s28_s13 }
   0xb   :  { %p539_p3 = scmp.ne.s32.totalorder %s28_s13, %s538_s23  ;;  %p544_p5 = scmp.lt.s32.totalorder %s538_s23, %s538_s23 }
   0xd   :  { %p545_p6 = por %p544_p5, %p543_p4 }
   0xf   :  { %p546_p7 = pnand %p545_p6, %p539_p3 }
  0x11   :  { %549 = shalt.err (!%p546_p7)
}
  0x12   :  { %30 = dma.hbm_to_vmem [thread:$0]  %s941_s1, 128, %s28_s13, [#allocation6]  }
  0x13   :  { %s550_s28 = scalar_lea.hbm %s940_s0, 128 }
  0x14   :  { %p551_p8 = scmp.ne.s32.totalorder %s940_s0, %s550_s28  ;;  %p554_p9 = scmp.lt.u32.totalorder %s550_s28, %s940_s0 }
  0x16   :  { %p556_p10 = pnand %p554_p9, %p551_p8 }
  0x18   :  { %559 = shalt.err (!%p556_p10)
}
  0x19   :  { %s560_s6 = scalar_lea.vmem %s18_s15, 128  ;;  %p565_p12 = scmp.lt.s32.totalorder %s18_s15, %s18_s15 }
  0x1a   :  { %p561_p11 = scmp.ne.s32.totalorder %s18_s15, %s560_s6  ;;  %p566_p13 = scmp.lt.s32.totalorder %s560_s6, %s560_s6 }
  0x1c   :  { %p567_p0 = por %p566_p13, %p565_p12 }
  0x1e   :  { %p568_p1 = pnand %p567_p0, %p561_p11 }
  0x20   :  { %571 = shalt.err (!%p568_p1)
}
  0x21   :  { %20 = dma.hbm_to_vmem [thread:$0]  %s940_s0, 128, %s18_s15, [#allocation3]  }
  0x22   :  { %s624_s8 = smov [#allocation7]   ;;  %s572_s12 = scalar_lea.hbm %s942_s2, 512 }
  0x23   :  { %s36_s9 = sshll.u32 %s624_s8, 4  ;;  %p573_p2 = scmp.ne.s32.totalorder %s942_s2, %s572_s12  ;;  %s37_s9 = int_to_ptr.vmem [resolvable:$true] %s36_s9 }
  0x24   :  { %p576_p3 = scmp.lt.u32.totalorder %s572_s12, %s942_s2 }
  0x26   :  { %p578_p4 = pnand %p576_p3, %p573_p2 }
  0x28   :  { %581 = shalt.err (!%p578_p4)
}
  0x29   :  { %s582_s18 = scalar_lea.vmem %s37_s9, 512  ;;  %p587_p6 = scmp.lt.s32.totalorder %s37_s9, %s37_s9 }
  0x2a   :  { %p583_p5 = scmp.ne.s32.totalorder %s37_s9, %s582_s18  ;;  %p588_p7 = scmp.lt.s32.totalorder %s582_s18, %s582_s18 }
  0x2c   :  { %p589_p8 = por %p588_p7, %p587_p6 }
  0x2e   :  { %p590_p9 = pnand %p589_p8, %p583_p5 }
  0x30   :  { %593 = shalt.err (!%p590_p9)
}
  0x31   :  { %s625_s0 = smov 64   ;;  %s626_s15 = smov 4  }
  0x32   :  { %42 = dma.hbm_to_vmem [thread:$0]  %s942_s2, 512, %s37_s9, [#allocation6], %s625_s0, %s625_s0, %s626_s15  }
  0x33   :  { %616 = dma.done.wait [#allocation3], 128  }
  0x34   :  { %617 = vsyncadd [#allocation3], 4294967168 }
  0x35   :  { %618 = dma.done.wait [#allocation6], 640  }
  0x36   :  { %619 = vsyncadd [#allocation6], 4294966656  ;;  %vm99_vm0 = vcmask 1041409   ;;  %vm102_vm1 = vcmask 1042434   ;;  %vm105_vm2 = vcmask 1043459   ;;  %vm108_vm3 = vcmask 1044484  }
  0x37   :  { %v684_v0 = vld [vmem:[#allocation2] sm:$0xff]  ;;  %vm111_vm4 = vcmask 1045509   ;;  %v686_v1 = vld [vmem:[#allocation7 + $0x1] sm:$0x1]  ;;  %v688_v2 = vld [vmem:[#allocation7 + $0x5] sm:$0x1] }
  0x38   :  { %v54_v3 = vmul.f32 %v684_v0, %v684_v0  ;;  %vm114_vm5 = vcmask 1046534   ;;  %v692_v4 = vld [vmem:[#allocation7 + $0x9] sm:$0x1]  ;;  %v694_v5 = vld [vmem:[#allocation7 + $0xd] sm:$0x1]  ;;  %v211_v7 = vmul.f32 %v688_v2, %v688_v2  ;;  %vm117_vm6 = vcmask 1047559  }
  0x39   :  { %v696_v6 = vld [vmem:[#allocation7 + $0x11] sm:$0x1]  ;;  %v700_v8 = vld [vmem:[#allocation7 + $0x15] sm:$0x1]  ;;  %v702_v9 = vld [vmem:[#allocation7 + $0x19] sm:$0x1]  ;;  %v212_v11 = vmul.f32 %v692_v4, %v692_v4  ;;  %v213_v12 = vmul.f32 %v694_v5, %v694_v5  ;;  %v210_v17 = vmul.f32 %v686_v1, %v686_v1 }
  0x3a   :  { %v704_v10 = vld [vmem:[#allocation7 + $0x1d] sm:$0x1]  ;;  %v214_v13 = vmul.f32 %v696_v6, %v696_v6  ;;  %55 = vadd.xlane.f32.xlu0 %v54_v3  ;;  %v192_v14 = vrot.slane %v688_v2, 7  ;;  %v194_v15 = vrot.slane %v692_v4, 6  ;;  %v196_v16 = vrot.slane %v694_v5, 5  ;;  %s627_s2 = smov [#allocation8]  }
  0x3b   :  { %v717_v18 = vld [vmem:[#allocation7] sm:$0x1]  ;;  %v198_v19 = vrot.slane %v696_v6, 4  ;;  %v200_v20 = vrot.slane %v700_v8, 3  ;;  %v202_v21 = vrot.slane %v702_v9, 2  ;;  %v215_v22 = vmul.f32 %v700_v8, %v700_v8  ;;  %s470_s21 = sshll.u32 %s627_s2, 4  ;;  %s471_s21 = int_to_ptr.vmem [resolvable:$true] %s470_s21 }
  0x3c   :  { %v724_v23 = vld [vmem:[#allocation7 + $0x4] sm:$0x1]  ;;  %v216_v24 = vmul.f32 %v702_v9, %v702_v9  ;;  %v217_v25 = vmul.f32 %v704_v10, %v704_v10  ;;  %v226_v26 = vrot.slane %v211_v7, 7  ;;  %v228_v27 = vrot.slane %v212_v11, 6  ;;  %v730_v28 = vld [vmem:[#allocation7 + $0x8] sm:$0x1]  ;;  %p599_p11 = scmp.lt.s32.totalorder %s471_s21, %s471_s21 }
  0x3d   :  { %v732_v29 = vld [vmem:[#allocation7 + $0xc] sm:$0x1]  ;;  %v230_v30 = vrot.slane %v213_v12, 5  ;;  %v232_v31 = vrot.slane %v214_v13, 4  ;;  %v234_v32 = vrot.slane %v215_v22, 3  ;;  %v123_v34 = vmul.f32 %v717_v18, %v717_v18  ;;  %s594_s23 = scalar_lea.vmem %s471_s21, 16 }
  0x3e   :  { %v734_v33 = vld [vmem:[#allocation7 + $0x10] sm:$0x1]  ;;  %v227_v35 = vsel %vm99_vm0, %v226_v26, %v210_v17  ;;  %v236_v36 = vrot.slane %v216_v24, 2  ;;  %v238_v37 = vrot.slane %v217_v25, 1  ;;  %v739_v38 = vld [vmem:[#allocation7 + $0x14] sm:$0x1]  ;;  %v124_v40 = vmul.f32 %v724_v23, %v724_v23  ;;  %p595_p10 = scmp.ne.s32.totalorder %s471_s21, %s594_s23 }
  0x3f   :  { %v741_v39 = vld [vmem:[#allocation7 + $0x18] sm:$0x1]  ;;  %v229_v41 = vsel %vm102_vm1, %v228_v27, %v227_v35  ;;  %v746_v42 = vld [vmem:[#allocation7 + $0x1c] sm:$0x1]  ;;  %v125_v43 = vmul.f32 %v730_v28, %v730_v28  ;;  %v126_v44 = vmul.f32 %v732_v29, %v732_v29  ;;  %v127_v45 = vmul.f32 %v734_v33, %v734_v33  ;;  %v754_v46 = vld [vmem:[#allocation7 + $0x2] sm:$0x1] }
  0x40   :  { %v231_v47 = vsel %vm105_vm2, %v230_v30, %v229_v41  ;;  %v128_v48 = vmul.f32 %v739_v38, %v739_v38  ;;  %v129_v49 = vmul.f32 %v741_v39, %v741_v39  ;;  %v130_v50 = vmul.f32 %v746_v42, %v746_v42  ;;  %v763_v51 = vld [vmem:[#allocation7 + $0x6] sm:$0x1]  ;;  %v765_v52 = vld [vmem:[#allocation7 + $0xa] sm:$0x1]  ;;  %v767_v53 = vld [vmem:[#allocation7 + $0xe] sm:$0x1] }
  0x41   :  { %v233_v54 = vsel %vm108_vm3, %v232_v31, %v231_v47  ;;  %v139_v55 = vrot.slane %v124_v40, 7  ;;  %v141_v56 = vrot.slane %v125_v43, 6  ;;  %v143_v57 = vrot.slane %v126_v44, 5  ;;  %v770_v58 = vld [vmem:[#allocation7 + $0x12] sm:$0x1]  ;;  %s598_s24 = scalar_lea.vmem %s471_s21, 32 }
  0x42   :  { %v235_v59 = vsel %vm111_vm4, %v234_v32, %v233_v54  ;;  %v145_v60 = vrot.slane %v127_v45, 4  ;;  %v147_v61 = vrot.slane %v128_v48, 3  ;;  %v149_v62 = vrot.slane %v129_v49, 2  ;;  %v773_v63 = vld [vmem:[#allocation7 + $0x16] sm:$0x1]  ;;  %p600_p12 = scmp.lt.s32.totalorder %s598_s24, %s594_s23 }
  0x43   :  { %v237_v3 = vsel %vm114_vm5, %v236_v36, %v235_v59  ;;  %v140_v7 = vsel %vm99_vm0, %v139_v55, %v123_v34  ;;  %v151_v11 = vrot.slane %v130_v50, 1  ;;  %v777_v12 = vld [vmem:[#allocation7 + $0x1a] sm:$0x1]  ;;  %v779_v13 = vld [vmem:[#allocation7 + $0x1e] sm:$0x1]  ;;  %v298_v17 = vmul.f32 %v754_v46, %v754_v46 }
  0x44   :  { %v239_v22 = vsel %vm117_vm6, %v238_v37, %v237_v3  ;;  %v142_v24 = vsel %vm102_vm1, %v141_v56, %v140_v7  ;;  %v299_v25 = vmul.f32 %v763_v51, %v763_v51  ;;  %v300_v26 = vmul.f32 %v765_v52, %v765_v52  ;;  %v796_v34 = vld [vmem:[#allocation7 + $0x3] sm:$0x1]  ;;  %v798_v35 = vld [vmem:[#allocation7 + $0x7] sm:$0x1]  ;;  %v805_v43 = vld [vmem:[#allocation7 + $0xb] sm:$0x1]  ;;  %p601_p13 = por %p600_p12, %p599_p11 }
  0x45   :  { %241 = vadd.xlane.f32.xlu1 %v239_v22  ;;  %v144_v27 = vsel %vm105_vm2, %v143_v57, %v142_v24  ;;  %v301_v30 = vmul.f32 %v767_v53, %v767_v53  ;;  %v302_v31 = vmul.f32 %v770_v58, %v770_v58  ;;  %v303_v32 = vmul.f32 %v773_v63, %v773_v63  ;;  %v807_v44 = vld [vmem:[#allocation7 + $0xf] sm:$0x1]  ;;  %v810_v50 = vld [vmem:[#allocation7 + $0x13] sm:$0x1]  ;;  %v814_v59 = vld [vmem:[#allocation7 + $0x17] sm:$0x1] }
  0x46   :  { %v146_v36 = vsel %vm108_vm3, %v145_v60, %v144_v27  ;;  %v304_v37 = vmul.f32 %v777_v12, %v777_v12  ;;  %v305_v40 = vmul.f32 %v779_v13, %v779_v13  ;;  %v314_v41 = vrot.slane %v299_v25, 7  ;;  %v816_v60 = vld [vmem:[#allocation7 + $0x1b] sm:$0x1]  ;;  %v820_v22 = vld [vmem:[#allocation7 + $0x1f] sm:$0x1]  ;;  %p602_p0 = pnand %p601_p13, %p595_p10 }
  0x47   :  { %v148_v45 = vsel %vm111_vm4, %v147_v61, %v146_v36  ;;  %v316_v47 = vrot.slane %v300_v26, 6  ;;  %v318_v48 = vrot.slane %v301_v30, 5  ;;  %v320_v49 = vrot.slane %v302_v31, 4 }
  0x48   :  { %v150_v54 = vsel %vm114_vm5, %v149_v62, %v148_v45  ;;  %v315_v55 = vsel %vm99_vm0, %v314_v41, %v298_v17  ;;  %v322_v56 = vrot.slane %v303_v32, 3  ;;  %v324_v57 = vrot.slane %v304_v37, 2 }
  0x49   :  { %v152_v3 = vsel %vm117_vm6, %v151_v11, %v150_v54  ;;  %v317_v7 = vsel %vm102_vm1, %v316_v47, %v315_v55  ;;  %v326_v61 = vrot.slane %v305_v40, 1  ;;  %v386_v24 = vmul.f32 %v796_v34, %v796_v34 }
  0x4a   :  { %154 = vadd.xlane.f32.xlu0 %v152_v3  ;;  %v319_v62 = vsel %vm105_vm2, %v318_v48, %v317_v7  ;;  %v387_v17 = vmul.f32 %v798_v35, %v798_v35  ;;  %v388_v25 = vmul.f32 %v805_v43, %v805_v43  ;;  %v389_v11 = vmul.f32 %v807_v44, %v807_v44 }
  0x4b   :  { %v321_v26 = vsel %vm108_vm3, %v320_v49, %v319_v62  ;;  %v390_v27 = vmul.f32 %v810_v50, %v810_v50  ;;  %v391_v30 = vmul.f32 %v814_v59, %v814_v59  ;;  %v392_v31 = vmul.f32 %v816_v60, %v816_v60 }
  0x4c   :  { %v323_v32 = vsel %vm111_vm4, %v322_v56, %v321_v26  ;;  %v393_v36 = vmul.f32 %v820_v22, %v820_v22  ;;  %v402_v37 = vrot.slane %v387_v17, 7  ;;  %v404_v40 = vrot.slane %v388_v25, 6 }
  0x4d   :  { %v325_v41 = vsel %vm114_vm5, %v324_v57, %v323_v32  ;;  %v406_v45 = vrot.slane %v389_v11, 5  ;;  %v408_v47 = vrot.slane %v390_v27, 4  ;;  %v410_v48 = vrot.slane %v391_v30, 3 }
  0x4e   :  { %v327_v49 = vsel %vm117_vm6, %v326_v61, %v325_v41  ;;  %v403_v54 = vsel %vm99_vm0, %v402_v37, %v386_v24  ;;  %v412_v55 = vrot.slane %v392_v31, 2  ;;  %v414_v3 = vrot.slane %v393_v36, 1 }
  0x4f   :  { %329 = vadd.xlane.f32.xlu1 %v327_v49  ;;  %v405_v7 = vsel %vm102_vm1, %v404_v40, %v403_v54  ;;  %v98_v56 = vrot.slane %v724_v23, 7  ;;  %v101_v62 = vrot.slane %v730_v28, 6  ;;  %v104_v17 = vrot.slane %v732_v29, 5  ;;  %v53_v54 = vld [vmem:[#allocation5] sm:$0xff] }
  0x50   :  { %v407_v57 = vsel %vm105_vm2, %v406_v45, %v405_v7  ;;  %v107_v25 = vrot.slane %v734_v33, 4  ;;  %v110_v11 = vrot.slane %v739_v38, 3  ;;  %v113_v61 = vrot.slane %v741_v39, 2 }
  0x51   :  { %v409_v24 = vsel %vm108_vm3, %v408_v47, %v407_v57  ;;  %v100_v26 = vsel %vm99_vm0, %v98_v56, %v717_v18  ;;  %v116_v27 = vrot.slane %v746_v42, 1  ;;  %v280_v23 = vrot.slane %v763_v51, 7 }
  0x52   :  { %v411_v28 = vsel %vm111_vm4, %v410_v48, %v409_v24  ;;  %v103_v29 = vsel %vm102_vm1, %v101_v62, %v100_v26  ;;  %v282_v30 = vrot.slane %v765_v52, 6  ;;  %v284_v33 = vrot.slane %v767_v53, 5 }
  0x53   :  { %v413_v38 = vsel %vm114_vm5, %v412_v55, %v411_v28  ;;  %v106_v39 = vsel %vm105_vm2, %v104_v17, %v103_v29  ;;  %v281_v31 = vsel %vm99_vm0, %v280_v23, %v754_v46  ;;  %v286_v18 = vrot.slane %v770_v58, 4 }
  0x54   :  { %v415_v42 = vsel %vm117_vm6, %v414_v3, %v413_v38  ;;  %v109_v51 = vsel %vm108_vm3, %v107_v25, %v106_v39  ;;  %v283_v32 = vsel %vm102_vm1, %v282_v30, %v281_v31  ;;  %v288_v36 = vrot.slane %v773_v63, 3 }
  0x55   :  { %417 = vadd.xlane.f32.xlu0 %v415_v42  ;;  %v112_v52 = vsel %vm111_vm4, %v110_v11, %v109_v51  ;;  %v285_v53 = vsel %vm105_vm2, %v284_v33, %v283_v32  ;;  %v290_v37 = vrot.slane %v777_v12, 2  ;;  %v292_v40 = vrot.slane %v779_v13, 1 }
  0x56   :  { %v204_v46 = vrot.slane %v704_v10, 1  ;;  %v115_v58 = vsel %vm114_vm5, %v113_v61, %v112_v52  ;;  %v287_v41 = vsel %vm108_vm3, %v286_v18, %v285_v53  ;;  %v193_v63 = vsel %vm99_vm0, %v192_v14, %v686_v1 }
  0x57   :  { %v118_v45 = vsel %vm117_vm6, %v116_v27, %v115_v58  ;;  %v289_v47 = vsel %vm111_vm4, %v288_v36, %v287_v41  ;;  %v195_v12 = vsel %vm102_vm1, %v194_v15, %v193_v63  ;;  %v368_v13 = vrot.slane %v798_v35, 7 }
  0x58   :  { %v120_v10 = vmul.f32 %v118_v45, %v684_v0  ;;  %v291_v48 = vsel %vm114_vm5, %v290_v37, %v289_v47  ;;  %v197_v2 = vsel %vm105_vm2, %v196_v16, %v195_v12  ;;  %v370_v1 = vrot.slane %v805_v43, 6 }
  0x59   :  { %v293_v14 = vsel %vm117_vm6, %v292_v40, %v291_v48  ;;  %v199_v4 = vsel %vm108_vm3, %v198_v19, %v197_v2  ;;  %v369_v15 = vsel %vm99_vm0, %v368_v13, %v796_v34  ;;  %v372_v35 = vrot.slane %v807_v44, 5 }
  0x5a   :  { %121 = vadd.xlane.f32.xlu1 %v120_v10  ;;  %v295_v49 = vmul.f32 %v293_v14, %v684_v0  ;;  %v201_v5 = vsel %vm111_vm4, %v200_v20, %v199_v4  ;;  %v371_v16 = vsel %vm102_vm1, %v370_v1, %v369_v15  ;;  %v374_v43 = vrot.slane %v810_v50, 4 }
  0x5b   :  { %v203_v6 = vsel %vm114_vm5, %v202_v21, %v201_v5  ;;  %v373_v19 = vsel %vm105_vm2, %v372_v35, %v371_v16  ;;  %v376_v34 = vrot.slane %v814_v59, 3  ;;  %v378_v44 = vrot.slane %v816_v60, 2 }
  0x5c   :  { %v205_v55 = vsel %vm117_vm6, %v204_v46, %v203_v6  ;;  %v375_v8 = vsel %vm108_vm3, %v374_v43, %v373_v19  ;;  %v380_v20 = vrot.slane %v820_v22, 1  ;;  %v64_v9 = vmul.f32 %v53_v54, %v53_v54 }
  0x5d   :  { %v207_v3 = vmul.f32 %v205_v55, %v684_v0  ;;  %v377_v50 = vsel %vm111_vm4, %v376_v34, %v375_v8  ;;  %v74_v60 = vmul.f32 %v53_v54, %v684_v0  ;;  %vm451_vm3 = vcmask 7168  }
  0x5e   :  { %296 = vadd.xlane.f32.xlu1 %v295_v49  ;;  %v379_v21 = vsel %vm114_vm5, %v378_v44, %v377_v50 }
  0x5f   :  { %208 = vadd.xlane.f32.xlu0 %v207_v3  ;;  %v381_v7 = vsel %vm117_vm6, %v380_v20, %v379_v21 }
  0x60   :  { %v383_v59 = vmul.f32 %v381_v7, %v684_v0 }
  0x62   :  { %65 = vadd.xlane.f32.xlu1 %v64_v9 }
  0x63   :  { %384 = vadd.xlane.f32.xlu0 %v383_v59 }
  0x67   :  { %75 = vadd.xlane.f32.xlu0 %v74_v60 }
  0xc7   :  { %v56_v56 = vpop.xlane.xlu0 %55 }
  0xc8   :  { %488 = vrsqrt.f32 %v56_v56  ;;  %vm59_vm7 = vcmp.eq.f32.partialorder %v56_v56, inf  ;;  %v62_v26 = vand.u32 2147483648, %v56_v56  ;;  %vm61_vm9 = vcmp.eq.f32.partialorder %v56_v56, 0.0 }
  0xd2   :  { %v242_v22 = vpop.xlane.xlu1 %241  ;;  %v489_v62 = vpop.eup %488 }
  0xd3   :  { %490 = vrsqrt.f32 %v242_v22  ;;  %v58_v57 = vmul.f32 %v489_v62, %v56_v56  ;;  %vm245_vm8 = vcmp.eq.f32.partialorder %v242_v22, inf  ;;  %v248_v27 = vand.u32 2147483648, %v242_v22 }
  0xd4   :  { %vm247_vm10 = vcmp.eq.f32.partialorder %v242_v22, 0.0 }
  0xd5   :  { %v60_v61 = vsel %vm59_vm7, %v56_v56, %v58_v57 }
  0xd6   :  { %v921_v23 = vsel %vm61_vm9, %v62_v26, %v60_v61 }
  0xd7   :  { %v155_v17 = vpop.xlane.xlu0 %154 }
  0xd8   :  { %492 = vrsqrt.f32 %v155_v17  ;;  %vm158_vm11 = vcmp.eq.f32.partialorder %v155_v17, inf  ;;  %v161_v39 = vand.u32 2147483648, %v155_v17  ;;  %vm160_vm12 = vcmp.eq.f32.partialorder %v155_v17, 0.0 }
  0xdc   :  { %v330_v25 = vpop.xlane.xlu1 %329 }
  0xdd   :  { %v491_v11 = vpop.eup %490  ;;  %494 = vrsqrt.f32 %v330_v25  ;;  %vm333_vm13 = vcmp.eq.f32.partialorder %v330_v25, inf  ;;  %v336_v53 = vand.u32 2147483648, %v330_v25  ;;  %vm335_vm14 = vcmp.eq.f32.partialorder %v330_v25, 0.0 }
  0xde   :  { %v244_v24 = vmul.f32 %v491_v11, %v242_v22 }
  0xe0   :  { %v246_v0 = vsel %vm245_vm8, %v242_v22, %v244_v24 }
  0xe1   :  { %v249_v28 = vsel %vm247_vm10, %v248_v27, %v246_v0 }
  0xe2   :  { %v493_v29 = vpop.eup %492  ;;  %v418_v30 = vpop.xlane.xlu0 %417  ;;  %v250_v33 = vmul.f32 %v249_v28, %v921_v23 }
  0xe3   :  { %v157_v38 = vmul.f32 %v493_v29, %v155_v17  ;;  %496 = vrsqrt.f32 %v418_v30  ;;  %vm421_vm15 = vcmp.eq.f32.partialorder %v418_v30, inf  ;;  %v424_v12 = vand.u32 2147483648, %v418_v30 }
  0xe4   :  { %v251_v31 = vmax.f32 %v250_v33, 1e-08  ;;  %vm423_vm0 = vcmp.eq.f32.partialorder %v418_v30, 0.0 }
  0xe5   :  { %v159_v18 = vsel %vm158_vm11, %v155_v17, %v157_v38 }
  0xe6   :  { %v162_v42 = vsel %vm160_vm12, %v161_v39, %v159_v18  ;;  %498 = vrcp.f32 %v251_v31 }
  0xe7   :  { %v495_v51 = vpop.eup %494  ;;  %v163_v32 = vmul.f32 %v162_v42, %v921_v23  ;;  %v122_v52 = vpop.xlane.xlu1 %121 }
  0xe8   :  { %v332_v36 = vmul.f32 %v495_v51, %v330_v25 }
  0xe9   :  { %v164_v37 = vmax.f32 %v163_v32, 1e-08 }
  0xea   :  { %v334_v40 = vsel %vm333_vm13, %v330_v25, %v332_v36 }
  0xeb   :  { %500 = vrcp.f32 %v164_v37  ;;  %v337_v46 = vsel %vm335_vm14, %v336_v53, %v334_v40  ;;  %v297_v45 = vpop.xlane.xlu1 %296 }
  0xec   :  { %v338_v58 = vmul.f32 %v337_v46, %v921_v23  ;;  %v209_v13 = vpop.xlane.xlu0 %208 }
  0xed   :  { %v497_v41 = vpop.eup %496 }
  0xee   :  { %v420_v63 = vmul.f32 %v497_v41, %v418_v30  ;;  %v339_v47 = vmax.f32 %v338_v58, 1e-08 }
  0xef   :  { %v66_v4 = vpop.xlane.xlu1 %65 }
  0xf0   :  { %v499_v10 = vpop.eup %498  ;;  %v422_v48 = vsel %vm421_vm15, %v418_v30, %v420_v63  ;;  %502 = vrcp.f32 %v339_v47  ;;  %v385_v9 = vpop.xlane.xlu0 %384  ;;  %vm69_vm1 = vcmp.eq.f32.partialorder %v66_v4, inf  ;;  %v72_v24 = vand.u32 2147483648, %v66_v4 }
  0xf1   :  { %v425_v2 = vsel %vm423_vm0, %v424_v12, %v422_v48  ;;  %v253_v1 = vmul.f32 %v499_v10, %v209_v13  ;;  %vm71_vm2 = vcmp.eq.f32.partialorder %v66_v4, 0.0 }
  0xf2   :  { %v426_v14 = vmul.f32 %v425_v2, %v921_v23 }
  0xf3   :  { %v254_v5 = vmul.f32 10.0, %v253_v1 }
  0xf4   :  { %v427_v15 = vmax.f32 %v426_v14, 1e-08  ;;  %v76_v12 = vpop.xlane.xlu0 %75 }
  0xf5   :  { %v501_v35 = vpop.eup %500 }
  0xf6   :  { %v166_v49 = vmul.f32 %v501_v35, %v122_v52  ;;  %504 = vrcp.f32 %v427_v15 }
  0xf7   :  { %506 = vrsqrt.f32 %v66_v4 }
  0xf8   :  { %v167_v16 = vmul.f32 10.0, %v166_v49 }
  0xfa   :  { %v503_v43 = vpop.eup %502  ;;  %v168_v54 = vsub.f32 -inf, %v167_v16  ;;  %v172_v6 = vsub.f32 %v167_v16, %v167_v16  ;;  %v255_v19 = vmax.f32 %v167_v16, %v254_v5 }
  0xfb   :  { %v341_v34 = vmul.f32 %v503_v43, %v297_v45 }
  0xfc   :  { %v169_v44 = vmul.f32 1.442695, %v168_v54  ;;  %v173_v55 = vmul.f32 1.442695, %v172_v6  ;;  %v256_v8 = vsub.f32 %v167_v16, %v255_v19  ;;  %v260_v3 = vsub.f32 %v254_v5, %v255_v19 }
  0xfd   :  { %v342_v20 = vmul.f32 10.0, %v341_v34 }
  0xfe   :  { %508 = vpow2.f32 %v169_v44  ;;  %v257_v50 = vmul.f32 1.442695, %v256_v8  ;;  %v261_v59 = vmul.f32 1.442695, %v260_v3 }
  0xff   :  { %v343_v21 = vmax.f32 %v255_v19, %v342_v20  ;;  %510 = vpow2.f32 %v173_v55 }
 0x100   :  { %v505_v7 = vpop.eup %504  ;;  %512 = vpow2.f32 %v257_v50 }
 0x101   :  { %v507_v60 = vpop.eup %506  ;;  %v344_v56 = vsub.f32 %v255_v19, %v343_v21  ;;  %v348_v22 = vsub.f32 %v342_v20, %v343_v21  ;;  %v429_v62 = vmul.f32 %v505_v7, %v385_v9  ;;  %514 = vpow2.f32 %v261_v59 }
 0x102   :  { %v68_v25 = vmul.f32 %v507_v60, %v66_v4 }
 0x103   :  { %v345_v17 = vmul.f32 1.442695, %v344_v56  ;;  %v430_v57 = vmul.f32 10.0, %v429_v62  ;;  %v349_v11 = vmul.f32 1.442695, %v348_v22 }
 0x104   :  { %v70_v28 = vsel %vm69_vm1, %v66_v4, %v68_v25 }
 0x105   :  { %v431_v61 = vmax.f32 %v343_v21, %v430_v57  ;;  %516 = vpow2.f32 %v345_v17  ;;  %v73_v31 = vsel %vm71_vm2, %v72_v24, %v70_v28 }
 0x106   :  { %518 = vpow2.f32 %v349_v11  ;;  %v77_v32 = vmul.f32 %v73_v31, %v921_v23 }
 0x107   :  { %v432_v26 = vsub.f32 %v343_v21, %v431_v61  ;;  %v436_v27 = vsub.f32 %v430_v57, %v431_v61 }
 0x108   :  { %v509_v0 = vpop.eup %508  ;;  %v78_v40 = vmax.f32 %v77_v32, 1e-08 }
 0x109   :  { %v171_v29 = vmul.f32 0.0, %v509_v0  ;;  %v433_v30 = vmul.f32 1.442695, %v432_v26  ;;  %v437_v33 = vmul.f32 1.442695, %v436_v27  ;;  %v511_v38 = vpop.eup %510 }
 0x10a   :  { %v513_v18 = vpop.eup %512 }
 0x10b   :  { %v175_v39 = vadd.f32 %v511_v38, %v171_v29  ;;  %520 = vpow2.f32 %v433_v30  ;;  %v515_v51 = vpop.eup %514 }
 0x10c   :  { %522 = vpow2.f32 %v437_v33 }
 0x10d   :  { %v259_v42 = vmul.f32 %v513_v18, %v175_v39  ;;  %524 = vrcp.f32 %v78_v40 }
 0x10f   :  { %v263_v36 = vadd.f32 %v515_v51, %v259_v42  ;;  %v517_v52 = vpop.eup %516 }
 0x110   :  { %v519_v37 = vpop.eup %518 }
 0x111   :  { %v347_v53 = vmul.f32 %v517_v52, %v263_v36 }
 0x113   :  { %v351_v46 = vadd.f32 %v519_v37, %v347_v53 }
 0x115   :  { %v521_v58 = vpop.eup %520 }
 0x116   :  { %v435_v41 = vmul.f32 %v521_v58, %v351_v46  ;;  %v523_v63 = vpop.eup %522 }
 0x117   :  { %v525_v47 = vpop.eup %524 }
 0x118   :  { %v439_v45 = vadd.f32 %v523_v63, %v435_v41  ;;  %v80_v13 = vmul.f32 %v525_v47, %v76_v12 }
 0x11a   :  { %526 = vlog2.f32 %v439_v45  ;;  %v81_v2 = vmul.f32 10.0, %v80_v13 }
 0x124   :  { %v527_v10 = vpop.eup %526 }
 0x125   :  { %v441_v48 = vmul.f32 0.6931472, %v527_v10 }
 0x127   :  { %v442_v1 = vadd.f32 %v441_v48, %v431_v61 }
 0x129   :  { %v443_v23 = vsub.f32 %v442_v1, %v81_v2 }
 0x12b   :  { %v452_v14 = vsel %vm451_vm3, %v443_v23, 0.0 }
 0x12c   :  { %453 = vadd.xlane.f32.xlu1 %v452_v14 }
 0x1b9   :  { %v454_v4 = vpop.xlane.xlu1 %453 }
 0x1ba   :  { %v455_v15 = vrot.slane %v454_v4, 4 }
 0x1bc   :  { %v456_v35 = vadd.f32 %v455_v15, %v454_v4 }
 0x1be   :  { %v457_v49 = vrot.slane %v456_v35, 2 }
 0x1c0   :  { %v458_v5 = vadd.f32 %v457_v49, %v456_v35 }
 0x1c2   :  { %v459_v16 = vrot.slane %v458_v5, 1 }
 0x1c4   :  { %v460_v43 = vadd.f32 %v459_v16, %v458_v5 }
 0x1c6   :  { %480 = vpush %v460_v43 }
 0x1f7   :  { %s481_s22 = spop %480 }
 0x1f8   :  { %v462_v54 = vstv %s481_s22 }
 0x1f9   :  { %463 = vst [vmem:[#allocation8] sm:$0x1] %v462_v54 }
 0x1fa   :  { %605 = shalt.err (!%p602_p0)
}
 0x1fb   :  { %s606_s27 = scalar_lea.hbm %s943_s3, 16 }
 0x1fc   :  { %p607_p1 = scmp.ne.s32.totalorder %s943_s3, %s606_s27  ;;  %p610_p2 = scmp.lt.u32.totalorder %s606_s27, %s943_s3 }
 0x1fe   :  { %p612_p3 = pnand %p610_p2, %p607_p1 }
 0x200   :  { %615 = shalt.err (!%p612_p3)
}
 0x201   :  { %473 = dma.vmem_to_hbm [thread:$0]  %s471_s21, 16, %s943_s3, [#allocation4]  }
 0x202   :  { %620 = dma.done.wait [#allocation4], 16  }
 0x203   :  { %621 = vsyncadd [#allocation4], 4294967280 }
 0x204   :  { %477 = vsyncpa [#allocation3], 1 }
 0x205   :  { %478 = vsyncpa [#allocation6], 1 }
 0x206   :  { %479 = vsyncpa [#allocation4], 1 }

</bundles_post_ra>
